<compile_context>
chip_gen: v7x
topology: tpu7x:2x2x1
jax: 0.10.0
libtpu: 0.0.40
codegen_flags: <defaults>
</compile_context>

<pallas_src>
import math

import jax
import jax.numpy as jnp
import numpy as np
from jax.experimental import pallas as pl
from jax.experimental.pallas import tpu as pltpu


def make_mha_kernel(n_head, d_k, d_v, d_model, len_q, len_k, batch_tile,
                    matmul_dtype, eps=1e-6):
    Bt = batch_tile
    G = Bt * n_head

    def kernel(q_ref, k_ref, v_ref,
               wq_ref, wk_ref, wv_ref, wfc_ref,
               gamma_ref, beta_ref,
               out_ref, attn_ref):
        # (Bt, L, D) -> (Bt*L, D): leading-dim merge only.
        q_res = q_ref[...].reshape(Bt * len_q, d_model)            # f32 residual
        q_in = q_res.astype(matmul_dtype)
        k_in = k_ref[...].reshape(Bt * len_k, d_model).astype(matmul_dtype)
        v_in = v_ref[...].reshape(Bt * len_k, d_model).astype(matmul_dtype)

        # --- QKV projections: y = x @ W.T with W.T prepared host-side --------
        # wq_ref is additionally pre-scaled by 1/sqrt(d_k) (hoisted score scale).
        Q = jnp.dot(q_in, wq_ref[...], preferred_element_type=jnp.float32)
        K = jnp.dot(k_in, wk_ref[...], preferred_element_type=jnp.float32)
        V = jnp.dot(v_in, wv_ref[...], preferred_element_type=jnp.float32)

        def to_heads(x2d, L, d):
            # (Bt*L, H*d) -> (Bt*H, L, d): combined (batch, head) leading batch
            # dim for ONE fused contraction over all heads/batches.
            return (x2d.reshape(Bt, L, n_head, d)
                        .transpose(0, 2, 1, 3)
                        .reshape(G, L, d))

        Qb = to_heads(Q, len_q, d_k).astype(matmul_dtype)
        Kb = to_heads(K, len_k, d_k).astype(matmul_dtype)
        Vb = to_heads(V, len_k, d_v).astype(matmul_dtype)

        # --- fused scaled dot-product attention over all (b, h) at once ------
        s = jnp.einsum('gqd,gkd->gqk', Qb, Kb,
                       preferred_element_type=jnp.float32)          # (G, Lq, Lk)
        # TODO(synk): optional attention mask not wired (mask=None path).
        m = jnp.max(s, axis=-1, keepdims=True)
        p = jnp.exp(s - m)                                           # f32 exp
        attn = p / jnp.sum(p, axis=-1, keepdims=True)                # exact softmax
        # dropout(attn) is identity in eval mode.

        # Natural PyTorch layout, no wrapper transpose needed: (Bt, H, Lq, Lk).
        attn_ref[...] = attn.reshape(Bt, n_head, len_q, len_k).astype(
            attn_ref.dtype)

        ctx = jnp.einsum('gqk,gkd->gqd', attn.astype(matmul_dtype), Vb,
                         preferred_element_type=jnp.float32)         # (G, Lq, dv)
        ctx = (ctx.reshape(Bt, n_head, len_q, d_v)
                  .transpose(0, 2, 1, 3)
                  .reshape(Bt * len_q, n_head * d_v)
                  .astype(matmul_dtype))

        # --- output projection + residual + LayerNorm -------------------------
        o = jnp.dot(ctx, wfc_ref[...], preferred_element_type=jnp.float32)
        # dropout(fc(.)) is identity in eval mode.
        o = o + q_res                                                 # residual
        mean = jnp.mean(o, axis=-1, keepdims=True)
        var = jnp.mean((o - mean) ** 2, axis=-1, keepdims=True)      # biased LN
        o = (o - mean) * jax.lax.rsqrt(var + eps)
        o = o * gamma_ref[...] + beta_ref[...]

        out_ref[...] = o.reshape(Bt, len_q, d_model).astype(out_ref.dtype)

    return kernel


def multi_head_attention(q, k, v, wq, wk, wv, wfc, gamma, beta,
                         n_head, d_k, d_v, *,
                         batch_tile=None,
                         matmul_dtype=jnp.bfloat16,
                         attn_dtype=jnp.float32,
                         vmem_limit_bytes=32 * 1024 * 1024):
    B, len_q, d_model = q.shape
    len_k = k.shape[1]
    if batch_tile is None:
        # >= 2 grid steps: shards the "parallel" axis across v7x's 2 TensorCores
        # and gives Pallas DMA/compute overlap on single-TC v5e/v6e.  For long
        # sequences add an Lq tile axis instead of only shrinking batch_tile.
        batch_tile = max(1, B // 2)
    assert B % batch_tile == 0
    Bt = batch_tile

    scale = 1.0 / math.sqrt(d_k)
    # Pre-transpose to [in, out] and fold the 1/sqrt(d_k) score scale into W_q
    # on the host: done once instead of per grid step inside the kernel.
    wq_t = (wq.T * scale).astype(matmul_dtype)          # (d_model, H*d_k)
    wk_t = wk.T.astype(matmul_dtype)                    # (d_model, H*d_k)
    wv_t = wv.T.astype(matmul_dtype)                    # (d_model, H*d_v)
    wfc_t = wfc.T.astype(matmul_dtype)                  # (H*d_v, d_model)
    gamma2d = gamma.reshape(1, d_model).astype(jnp.float32)
    beta2d = beta.reshape(1, d_model).astype(jnp.float32)

    kernel = make_mha_kernel(n_head, d_k, d_v, d_model, len_q, len_k,
                             Bt, matmul_dtype)

    # Constant-index (whole-array) blocks for the small weights / LN params.
    full = lambda arr: pl.BlockSpec(arr.shape, lambda b: (0,) * arr.ndim)

    out, attn = pl.pallas_call(
        kernel,
        out_shape=(
            jax.ShapeDtypeStruct((B, len_q, d_model), jnp.float32),
            jax.ShapeDtypeStruct((B, n_head, len_q, len_k), attn_dtype),
        ),
        grid_spec=pltpu.PrefetchScalarGridSpec(
            num_scalar_prefetch=0,
            grid=(B // Bt,),
            in_specs=[
                pl.BlockSpec((Bt, len_q, d_model), lambda b: (b, 0, 0)),
                pl.BlockSpec((Bt, len_k, d_model), lambda b: (b, 0, 0)),
                pl.BlockSpec((Bt, len_k, d_model), lambda b: (b, 0, 0)),
                full(wq_t), full(wk_t), full(wv_t), full(wfc_t),
                full(gamma2d), full(beta2d),
            ],
            out_specs=[
                pl.BlockSpec((Bt, len_q, d_model), lambda b: (b, 0, 0)),
                pl.BlockSpec((Bt, n_head, len_q, len_k),
                             lambda b: (b, 0, 0, 0)),
            ],
        ),
        compiler_params=pltpu.CompilerParams(
            dimension_semantics=("parallel",),
            vmem_limit_bytes=vmem_limit_bytes,
        ),
    )(q, k, v, wq_t, wk_t, wv_t, wfc_t, gamma2d, beta2d)

    return out, attn


def reference_mha(q, k, v, wq, wk, wv, wfc, gamma, beta, n_head, d_k, d_v):
    """Pure-JAX reference mirroring the PyTorch forward (eval mode)."""
    B, Lq, D = q.shape
    Lk = k.shape[1]
    residual = q
    Q = (q @ wq.T).reshape(B, Lq, n_head, d_k).transpose(0, 2, 1, 3)
    K = (k @ wk.T).reshape(B, Lk, n_head, d_k).transpose(0, 2, 1, 3)
    V = (v @ wv.T).reshape(B, Lk, n_head, d_v).transpose(0, 2, 1, 3)
    attn = jnp.einsum('bhqd,bhkd->bhqk', Q, K) / math.sqrt(d_k)
    attn = jax.nn.softmax(attn, axis=-1)
    ctx = jnp.einsum('bhqk,bhkd->bhqd', attn, V)
    ctx = ctx.transpose(0, 2, 1, 3).reshape(B, Lq, n_head * d_v)
    o = ctx @ wfc.T + residual
    mean = o.mean(-1, keepdims=True)
    var = ((o - mean) ** 2).mean(-1, keepdims=True)
    o = (o - mean) / jnp.sqrt(var + 1e-6) * gamma + beta
    return o, attn


if __name__ == "__main__":
    # Small shapes consistent with the module's forward.
    B, L, d_model = 2, 8, 32
    n_head, d_k, d_v = 4, 8, 8

    key = jax.random.PRNGKey(0)
    ks = jax.random.split(key, 7)
    q = jax.random.normal(ks[0], (B, L, d_model), jnp.float32)
    k = jax.random.normal(ks[1], (B, L, d_model), jnp.float32)
    v = jax.random.normal(ks[2], (B, L, d_model), jnp.float32)

    # Deterministic parameter init (nn.Linear weights are [out, in], no bias).
    wq = 0.1 * jax.random.normal(ks[3], (n_head * d_k, d_model), jnp.float32)
    wk = 0.1 * jax.random.normal(ks[4], (n_head * d_k, d_model), jnp.float32)
    wv = 0.1 * jax.random.normal(ks[5], (n_head * d_v, d_model), jnp.float32)
    wfc = 0.1 * jax.random.normal(ks[6], (d_model, n_head * d_v), jnp.float32)
    gamma = jnp.ones((d_model,), jnp.float32)   # LayerNorm default init
    beta = jnp.zeros((d_model,), jnp.float32)

    ref_out, ref_attn = reference_mha(q, k, v, wq, wk, wv, wfc, gamma, beta,
                                      n_head, d_k, d_v)

    # 1) f32 matmul path: tight check against the pure-f32 reference.
    out32, attn32 = multi_head_attention(q, k, v, wq, wk, wv, wfc, gamma, beta,
                                         n_head, d_k, d_v,
                                         matmul_dtype=jnp.float32)
    out32 = jax.block_until_ready(out32)
    attn32 = jax.block_until_ready(attn32)
    assert np.allclose(np.asarray(out32), np.asarray(ref_out),
                       atol=2e-3, rtol=2e-3)
    assert np.allclose(np.asarray(attn32), np.asarray(ref_attn),
                       atol=5e-4, rtol=0)

    # 2) Default bf16-MXU path (v6e/v7x-oriented): looser tolerance vs f32 ref.
    out, attn = multi_head_attention(q, k, v, wq, wk, wv, wfc, gamma, beta,
                                     n_head, d_k, d_v)
    out = jax.block_until_ready(out)
    attn = jax.block_until_ready(attn)
    assert np.allclose(np.asarray(out), np.asarray(ref_out),
                       atol=5e-2, rtol=5e-2)
    assert np.allclose(np.asarray(attn), np.asarray(ref_attn),
                       atol=2e-2, rtol=0)

    print("KERNEL_OK")
</pallas_src>

<mosaic_0001>
module attributes {stable_mosaic.version = 11 : i64} {
  func.func @kernel(%arg0: i32, %arg1: memref<1x8x32xf32, #tpu.memory_space<vmem>>, %arg2: memref<1x8x32xf32, #tpu.memory_space<vmem>>, %arg3: memref<1x8x32xf32, #tpu.memory_space<vmem>>, %arg4: memref<32x32xf32, #tpu.memory_space<vmem>>, %arg5: memref<32x32xf32, #tpu.memory_space<vmem>>, %arg6: memref<32x32xf32, #tpu.memory_space<vmem>>, %arg7: memref<32x32xf32, #tpu.memory_space<vmem>>, %arg8: memref<1x32xf32, #tpu.memory_space<vmem>>, %arg9: memref<1x32xf32, #tpu.memory_space<vmem>>, %arg10: memref<1x8x32xf32, #tpu.memory_space<vmem>>, %arg11: memref<1x4x8x8xf32, #tpu.memory_space<vmem>>) attributes {dimension_semantics = [#tpu.dimension_semantics<parallel>], iteration_bounds = array<i64: 2>, scalar_prefetch = 0 : i64, scratch_operands = 0 : i64, tpu.core_type = #tpu.core_type<tc>, window_params = [{transform_indices = @transform_0, window_bounds = array<i64: 1, 8, 32>}, {transform_indices = @transform_1, window_bounds = array<i64: 1, 8, 32>}, {transform_indices = @transform_2, window_bounds = array<i64: 1, 8, 32>}, {pipeline_mode = #tpu.pipeline_mode<synchronous>, transform_indices = @transform_3, window_bounds = array<i64: 32, 32>}, {pipeline_mode = #tpu.pipeline_mode<synchronous>, transform_indices = @transform_4, window_bounds = array<i64: 32, 32>}, {pipeline_mode = #tpu.pipeline_mode<synchronous>, transform_indices = @transform_5, window_bounds = array<i64: 32, 32>}, {pipeline_mode = #tpu.pipeline_mode<synchronous>, transform_indices = @transform_6, window_bounds = array<i64: 32, 32>}, {pipeline_mode = #tpu.pipeline_mode<synchronous>, transform_indices = @transform_7, window_bounds = array<i64: 1, 32>}, {pipeline_mode = #tpu.pipeline_mode<synchronous>, transform_indices = @transform_8, window_bounds = array<i64: 1, 32>}, {transform_indices = @transform_9, window_bounds = array<i64: 1, 8, 32>}, {transform_indices = @transform_10, window_bounds = array<i64: 1, 4, 8, 8>}]} {
    %c0 = arith.constant 0 : index
    %c0_0 = arith.constant 0 : index
    %c0_1 = arith.constant 0 : index
    %0 = vector.load %arg1[%c0, %c0_0, %c0_1] : memref<1x8x32xf32, #tpu.memory_space<vmem>>, vector<1x8x32xf32>
    %1 = vector.shape_cast %0 : vector<1x8x32xf32> to vector<8x32xf32>
    %c0_2 = arith.constant 0 : index
    %c0_3 = arith.constant 0 : index
    %c0_4 = arith.constant 0 : index
    %2 = vector.load %arg2[%c0_2, %c0_3, %c0_4] : memref<1x8x32xf32, #tpu.memory_space<vmem>>, vector<1x8x32xf32>
    %3 = vector.shape_cast %2 : vector<1x8x32xf32> to vector<8x32xf32>
    %c0_5 = arith.constant 0 : index
    %c0_6 = arith.constant 0 : index
    %c0_7 = arith.constant 0 : index
    %4 = vector.load %arg3[%c0_5, %c0_6, %c0_7] : memref<1x8x32xf32, #tpu.memory_space<vmem>>, vector<1x8x32xf32>
    %5 = vector.shape_cast %4 : vector<1x8x32xf32> to vector<8x32xf32>
    %c0_8 = arith.constant 0 : index
    %c0_9 = arith.constant 0 : index
    %6 = vector.load %arg4[%c0_8, %c0_9] : memref<32x32xf32, #tpu.memory_space<vmem>>, vector<32x32xf32>
    %cst = arith.constant dense<0.000000e+00> : vector<8x32xf32>
    %7 = tpu.matmul %1, %6, %cst {dimension_numbers = #tpu.dot_dimension_numbers<[1], [0], [0], [1], [0, 0, 1, 1], [], []>} : vector<8x32xf32>, vector<32x32xf32>, vector<8x32xf32> -> vector<8x32xf32>
    %c0_10 = arith.constant 0 : index
    %c0_11 = arith.constant 0 : index
    %8 = vector.load %arg5[%c0_10, %c0_11] : memref<32x32xf32, #tpu.memory_space<vmem>>, vector<32x32xf32>
    %cst_12 = arith.constant dense<0.000000e+00> : vector<8x32xf32>
    %9 = tpu.matmul %3, %8, %cst_12 {dimension_numbers = #tpu.dot_dimension_numbers<[1], [0], [0], [1], [0, 0, 1, 1], [], []>} : vector<8x32xf32>, vector<32x32xf32>, vector<8x32xf32> -> vector<8x32xf32>
    %c0_13 = arith.constant 0 : index
    %c0_14 = arith.constant 0 : index
    %10 = vector.load %arg6[%c0_13, %c0_14] : memref<32x32xf32, #tpu.memory_space<vmem>>, vector<32x32xf32>
    %cst_15 = arith.constant dense<0.000000e+00> : vector<8x32xf32>
    %11 = tpu.matmul %5, %10, %cst_15 {dimension_numbers = #tpu.dot_dimension_numbers<[1], [0], [0], [1], [0, 0, 1, 1], [], []>} : vector<8x32xf32>, vector<32x32xf32>, vector<8x32xf32> -> vector<8x32xf32>
    %12 = vector.shape_cast %7 : vector<8x32xf32> to vector<1x8x4x8xf32>
    %13 = tpu.transpose %12, [0, 2, 1, 3] : vector<1x8x4x8xf32> -> vector<1x4x8x8xf32>
    %14 = vector.shape_cast %13 : vector<1x4x8x8xf32> to vector<4x8x8xf32>
    %15 = vector.shape_cast %9 : vector<8x32xf32> to vector<1x8x4x8xf32>
    %16 = tpu.transpose %15, [0, 2, 1, 3] : vector<1x8x4x8xf32> -> vector<1x4x8x8xf32>
    %17 = vector.shape_cast %16 : vector<1x4x8x8xf32> to vector<4x8x8xf32>
    %18 = vector.shape_cast %11 : vector<8x32xf32> to vector<1x8x4x8xf32>
    %19 = tpu.transpose %18, [0, 2, 1, 3] : vector<1x8x4x8xf32> -> vector<1x4x8x8xf32>
    %20 = vector.shape_cast %19 : vector<1x4x8x8xf32> to vector<4x8x8xf32>
    "tpu.trace_start"() <{level = 10 : i32, message = "gqd,gkd->gqk"}> : () -> ()
    %cst_16 = arith.constant dense<0.000000e+00> : vector<4x8x8xf32>
    %21 = tpu.matmul %14, %17, %cst_16 {dimension_numbers = #tpu.dot_dimension_numbers<[2], [2], [1], [1], [0, 0, 0, 1, 1, 1], [0], [0]>} : vector<4x8x8xf32>, vector<4x8x8xf32>, vector<4x8x8xf32> -> vector<4x8x8xf32>
    "tpu.trace_stop"() : () -> ()
    %cst_17 = arith.constant dense<0xFF800000> : vector<4x8xf32>
    %22 = vector.multi_reduction <maximumf>, %21, %cst_17 [2] : vector<4x8x8xf32> to vector<4x8xf32>
    %23 = vector.shape_cast %22 : vector<4x8xf32> to vector<4x8x1xf32>
    %24 = vector.broadcast %23 : vector<4x8x1xf32> to vector<4x8x8xf32>
    %25 = arith.subf %21, %24 : vector<4x8x8xf32>
    %26 = math.exp %25 : vector<4x8x8xf32>
    %cst_18 = arith.constant dense<0.000000e+00> : vector<4x8xf32>
    %27 = vector.multi_reduction <add>, %26, %cst_18 [2] : vector<4x8x8xf32> to vector<4x8xf32>
    %28 = vector.shape_cast %27 : vector<4x8xf32> to vector<4x8x1xf32>
    %29 = vector.broadcast %28 : vector<4x8x1xf32> to vector<4x8x8xf32>
    %30 = arith.divf %26, %29 : vector<4x8x8xf32>
    %31 = vector.shape_cast %30 : vector<4x8x8xf32> to vector<1x4x8x8xf32>
    %c0_19 = arith.constant 0 : index
    %c0_20 = arith.constant 0 : index
    %c0_21 = arith.constant 0 : index
    %c0_22 = arith.constant 0 : index
    %32 = vector.load %arg11[%c0_19, %c0_20, %c0_21, %c0_22] : memref<1x4x8x8xf32, #tpu.memory_space<vmem>>, vector<1x4x8x8xf32>
    tpu.vector_store %arg11[%c0_19, %c0_20, %c0_21, %c0_22], %31 {strides = array<i32>} : memref<1x4x8x8xf32, #tpu.memory_space<vmem>>, vector<1x4x8x8xf32>,
    "tpu.trace_start"() <{level = 10 : i32, message = "gqk,gkd->gqd"}> : () -> ()
    %cst_23 = arith.constant dense<0.000000e+00> : vector<4x8x8xf32>
    %33 = tpu.matmul %30, %20, %cst_23 {dimension_numbers = #tpu.dot_dimension_numbers<[2], [1], [1], [2], [0, 0, 0, 1, 1, 2], [0], [0]>} : vector<4x8x8xf32>, vector<4x8x8xf32>, vector<4x8x8xf32> -> vector<4x8x8xf32>
    "tpu.trace_stop"() : () -> ()
    %34 = vector.shape_cast %33 : vector<4x8x8xf32> to vector<1x4x8x8xf32>
    %35 = tpu.transpose %34, [0, 2, 1, 3] : vector<1x4x8x8xf32> -> vector<1x8x4x8xf32>
    %36 = vector.shape_cast %35 : vector<1x8x4x8xf32> to vector<8x32xf32>
    %c0_24 = arith.constant 0 : index
    %c0_25 = arith.constant 0 : index
    %37 = vector.load %arg7[%c0_24, %c0_25] : memref<32x32xf32, #tpu.memory_space<vmem>>, vector<32x32xf32>
    %cst_26 = arith.constant dense<0.000000e+00> : vector<8x32xf32>
    %38 = tpu.matmul %36, %37, %cst_26 {dimension_numbers = #tpu.dot_dimension_numbers<[1], [0], [0], [1], [0, 0, 1, 1], [], []>} : vector<8x32xf32>, vector<32x32xf32>, vector<8x32xf32> -> vector<8x32xf32>
    %39 = arith.addf %38, %1 : vector<8x32xf32>
    %cst_27 = arith.constant dense<0.000000e+00> : vector<8xf32>
    %40 = vector.multi_reduction <add>, %39, %cst_27 [1] : vector<8x32xf32> to vector<8xf32>
    %41 = vector.shape_cast %40 : vector<8xf32> to vector<8x1xf32>
    %cst_28 = arith.constant 3.200000e+01 : f32
    %42 = vector.broadcast %cst_28 : f32 to vector<8x1xf32>
    %43 = arith.divf %41, %42 : vector<8x1xf32>
    %44 = vector.broadcast %43 : vector<8x1xf32> to vector<8x32xf32>
    %45 = arith.subf %39, %44 : vector<8x32xf32>
    %46 = arith.mulf %45, %45 : vector<8x32xf32>
    %cst_29 = arith.constant dense<0.000000e+00> : vector<8xf32>
    %47 = vector.multi_reduction <add>, %46, %cst_29 [1] : vector<8x32xf32> to vector<8xf32>
    %48 = vector.shape_cast %47 : vector<8xf32> to vector<8x1xf32>
    %cst_30 = arith.constant 3.200000e+01 : f32
    %49 = vector.broadcast %cst_30 : f32 to vector<8x1xf32>
    %50 = arith.divf %48, %49 : vector<8x1xf32>
    %51 = vector.broadcast %43 : vector<8x1xf32> to vector<8x32xf32>
    %52 = arith.subf %39, %51 : vector<8x32xf32>
    %cst_31 = arith.constant 9.99999997E-7 : f32
    %53 = vector.broadcast %cst_31 : f32 to vector<8x1xf32>
    %54 = arith.addf %50, %53 : vector<8x1xf32>
    %55 = math.rsqrt %54 : vector<8x1xf32>
    %56 = vector.broadcast %55 : vector<8x1xf32> to vector<8x32xf32>
    %57 = arith.mulf %52, %56 : vector<8x32xf32>
    %c0_32 = arith.constant 0 : index
    %c0_33 = arith.constant 0 : index
    %58 = vector.load %arg8[%c0_32, %c0_33] : memref<1x32xf32, #tpu.memory_space<vmem>>, vector<1x32xf32>
    %59 = vector.broadcast %58 : vector<1x32xf32> to vector<8x32xf32>
    %60 = arith.mulf %57, %59 : vector<8x32xf32>
    %c0_34 = arith.constant 0 : index
    %c0_35 = arith.constant 0 : index
    %61 = vector.load %arg9[%c0_34, %c0_35] : memref<1x32xf32, #tpu.memory_space<vmem>>, vector<1x32xf32>
    %62 = vector.broadcast %61 : vector<1x32xf32> to vector<8x32xf32>
    %63 = arith.addf %60, %62 : vector<8x32xf32>
    %64 = vector.shape_cast %63 : vector<8x32xf32> to vector<1x8x32xf32>
    %c0_36 = arith.constant 0 : index
    %c0_37 = arith.constant 0 : index
    %c0_38 = arith.constant 0 : index
    %65 = vector.load %arg10[%c0_36, %c0_37, %c0_38] : memref<1x8x32xf32, #tpu.memory_space<vmem>>, vector<1x8x32xf32>
    tpu.vector_store %arg10[%c0_36, %c0_37, %c0_38], %64 {strides = array<i32>} : memref<1x8x32xf32, #tpu.memory_space<vmem>>, vector<1x8x32xf32>,
    return
  }
  func.func @transform_0(%arg0: i32) -> (i32, i32, i32) {
    %c0_i32 = arith.constant 0 : i32
    %c0_i32_0 = arith.constant 0 : i32
    %c0_i32_1 = arith.constant 0 : i32
    return %arg0, %c0_i32, %c0_i32_0 : i32, i32, i32
  }
  func.func @transform_1(%arg0: i32) -> (i32, i32, i32) {
    %c0_i32 = arith.constant 0 : i32
    %c0_i32_0 = arith.constant 0 : i32
    %c0_i32_1 = arith.constant 0 : i32
    return %arg0, %c0_i32, %c0_i32_0 : i32, i32, i32
  }
  func.func @transform_2(%arg0: i32) -> (i32, i32, i32) {
    %c0_i32 = arith.constant 0 : i32
    %c0_i32_0 = arith.constant 0 : i32
    %c0_i32_1 = arith.constant 0 : i32
    return %arg0, %c0_i32, %c0_i32_0 : i32, i32, i32
  }
  func.func @transform_3(%arg0: i32) -> (i32, i32) {
    %c0_i32 = arith.constant 0 : i32
    %c0_i32_0 = arith.constant 0 : i32
    %c0_i32_1 = arith.constant 0 : i32
    return %c0_i32, %c0_i32_0 : i32, i32
  }
  func.func @transform_4(%arg0: i32) -> (i32, i32) {
    %c0_i32 = arith.constant 0 : i32
    %c0_i32_0 = arith.constant 0 : i32
    %c0_i32_1 = arith.constant 0 : i32
    return %c0_i32, %c0_i32_0 : i32, i32
  }
  func.func @transform_5(%arg0: i32) -> (i32, i32) {
    %c0_i32 = arith.constant 0 : i32
    %c0_i32_0 = arith.constant 0 : i32
    %c0_i32_1 = arith.constant 0 : i32
    return %c0_i32, %c0_i32_0 : i32, i32
  }
  func.func @transform_6(%arg0: i32) -> (i32, i32) {
    %c0_i32 = arith.constant 0 : i32
    %c0_i32_0 = arith.constant 0 : i32
    %c0_i32_1 = arith.constant 0 : i32
    return %c0_i32, %c0_i32_0 : i32, i32
  }
  func.func @transform_7(%arg0: i32) -> (i32, i32) {
    %c0_i32 = arith.constant 0 : i32
    %c0_i32_0 = arith.constant 0 : i32
    %c0_i32_1 = arith.constant 0 : i32
    return %c0_i32, %c0_i32_0 : i32, i32
  }
  func.func @transform_8(%arg0: i32) -> (i32, i32) {
    %c0_i32 = arith.constant 0 : i32
    %c0_i32_0 = arith.constant 0 : i32
    %c0_i32_1 = arith.constant 0 : i32
    return %c0_i32, %c0_i32_0 : i32, i32
  }
  func.func @transform_9(%arg0: i32) -> (i32, i32, i32) {
    %c0_i32 = arith.constant 0 : i32
    %c0_i32_0 = arith.constant 0 : i32
    %c0_i32_1 = arith.constant 0 : i32
    return %arg0, %c0_i32, %c0_i32_0 : i32, i32, i32
  }
  func.func @transform_10(%arg0: i32) -> (i32, i32, i32, i32) {
    %c0_i32 = arith.constant 0 : i32
    %c0_i32_0 = arith.constant 0 : i32
    %c0_i32_1 = arith.constant 0 : i32
    %c0_i32_2 = arith.constant 0 : i32
    return %arg0, %c0_i32, %c0_i32_0, %c0_i32_1 : i32, i32, i32, i32
  }
}

</mosaic_0001>

<bundles_post_ra>
// kernel: tpu_custom_call.1
= control target key start
LH: loop header
LB: loop body
LE: loop exit
PB: predicated region body
PF: predicated region fallthrough
CT: control target
= control target key end

     0   :  { %s3611_s0 = inlined_call_operand.hbm [shape: f32[2,8,32], index: 0, kind: input, shape index: {}]   ;;  %s3612_s1 = inlined_call_operand.hbm [shape: f32[2,8,32], index: 1, kind: input, shape index: {}]   ;;  %s3613_s2 = inlined_call_operand.hbm [shape: f32[2,8,32], index: 2, kind: input, shape index: {}]   ;;  %s3614_s3 = inlined_call_operand.hbm [shape: f32[32,32], index: 3, kind: input, shape index: {}]   ;;  %s3615_s4 = inlined_call_operand.hbm [shape: f32[32,32], index: 4, kind: input, shape index: {}]   ;;  %s3616_s5 = inlined_call_operand.hbm [shape: f32[32,32], index: 5, kind: input, shape index: {}]   ;;  %s3617_s6 = inlined_call_operand.hbm [shape: f32[32,32], index: 6, kind: input, shape index: {}]   ;;  %s3618_s7 = inlined_call_operand.vmem [shape: f32[1,32], index: 7, kind: input, shape index: {}]   ;;  %s3619_s8 = inlined_call_operand.vmem [shape: f32[1,32], index: 8, kind: input, shape index: {}]   ;;  %s3620_s9 = inlined_call_operand.hbm [shape: f32[2,8,32], index: 9, kind: output, shape index: {0}]   ;;  %s3621_s10 = inlined_call_operand.hbm [shape: f32[2,4,8,8], index: 10, kind: output, shape index: {1}]  }
   0x1   :  { %3646 = sst [smem:[#allocation28_spill]] %s3612_s1 }
   0x2   :  { %3647 = sst [smem:[#allocation29_spill]] %s3614_s3 }
   0x3   :  { %3648 = sst [smem:[#allocation30_spill]] %s3616_s5 }
   0x4   :  { %3649 = sst [smem:[#allocation31_spill]] %s3618_s7 }
   0x5   :  { %3650 = sst [smem:[#allocation32_spill]] %s3619_s8 }
   0x6   :  { %3651 = sst [smem:[#allocation33_spill]] %s3620_s9 }
   0x7   :  { %3652 = sst [smem:[#allocation34_spill]] %s3621_s10 }
   0x8   :  { %16 = vsyncpa [#allocation3], 0 }
   0x9   :  { %18 = vsyncpa [#allocation3 + $0x1], 0 }
   0xa   :  { %19 = vsyncpa [#allocation6], 0 }
   0xb   :  { %21 = vsyncpa [#allocation6 + $0x1], 0 }
   0xc   :  { %22 = vsyncpa [#allocation9], 0 }
   0xd   :  { %23 = vsyncpa [#allocation12], 0 }
   0xe   :  { %24 = vsyncpa [#allocation4], 0 }
   0xf   :  { %26 = vsyncpa [#allocation4 + $0x1], 0 }
  0x10   :  { %27 = vsyncpa [#allocation16], 0 }
  0x11   :  { %29 = vsyncpa [#allocation16 + $0x1], 0  ;;  %s3039_s13 = smov 0   ;;  %s3041_s14 = smov 0  }
  0x12   :  { %s3043_s15 = smov 0   ;;  %s3045_s16 = smov 0  }
  0x13 LB: > { %3653 = sst [smem:[#allocation23_spill]] %s2947_s13  ;;  %s2961_s17 = smov [#allocation8]   ;;  %s2959_s16 = sphi %s3045_s16, %s3694_s16   ;;  %s2955_s15 = sphi %s3043_s15, %s3698_s15   ;;  %s2951_s14 = sphi %s3041_s14, %s3697_s14   ;;  %s2947_s13 = sphi %s3039_s13, %s3696_s13  }
  0x14   : > { %3654 = sst [smem:[#allocation24_spill]] %s2959_s16  ;;  %s308_s18 = sshll.u32 %s2961_s17, 4  ;;  %s3065_s18 = int_to_ptr.vmem [resolvable:$true] %s308_s18 }
  0x15   : > { %s3060_s19 = sadd.s32 4294967295, %s2959_s16   ;;  %p2313_p0 = scmp.ge.s32.totalorder %s2959_s16, 1 }
  0x16   : > { %p3634_p1 = scmp.eq.s32.totalorder %s3060_s19, 0  ;;  %p296_p2 = scmp.lt.s32.totalorder %s2959_s16, 3 }
  0x17   : > { %s2962_s21 = smov [#allocation11]   ;;  %s3657_s3 = sld [smem:[#allocation29_spill]] }
  0x18   : > { %p3067_p3 = pnand %p2313_p0, %p296_p2  ;;  %s334_s22 = sshll.u32 %s2962_s21, 4  ;;  %s3080_s22 = int_to_ptr.vmem [resolvable:$true] %s334_s22 }
  0x1a   : > { %s3655_s20 = scalar_select %p3067_p3, 1, 0 }
  0x1b   : > { %p2539_p5 = pneg %p3067_p3 }
  0x1d   : > { %p3076_p6 = pnand %p2539_p5, %p3634_p1  ;;  %s2647_s26 = scalar_lea.hbm %s3657_s3, 512 }
  0x1e   : > { %p2648_p7 = scmp.ne.s32.totalorder %s3657_s3, %s2647_s26  ;;  %p2654_p11 = scmp.lt.u32.totalorder %s2647_s26, %s3657_s3 }
  0x1f   : > { %s3656_s23 = scalar_select %p3076_p6, 1, 0 }
  0x20   : > { %p3090_p8 = pneg %p3076_p6 }
  0x22   : > { %s3658_s29 = scalar_select %p3090_p8, 1, 0 }
  0x23   : > { %p2650_p9 = pnand %p3090_p8, %p2648_p7 }
  0x25   : > { %p2651_p10 = pneg %p2650_p9 }
  0x27   : > { %p2656_p12 = pnand %p2654_p11, %p2651_p10 }
  0x29   : > { %2659 = shalt.err (!%p2656_p12)
}
  0x2a   : > { %s2660_s12 = scalar_lea.vmem %s3065_s18, 512  ;;  %p2668_p5 = scmp.lt.s32.totalorder %s3065_s18, %s3065_s18 }
  0x2b   : > { %p2661_p13 = scmp.ne.s32.totalorder %s3065_s18, %s2660_s12  ;;  %p2669_p4 = scmp.lt.s32.totalorder %s2660_s12, %s2660_s12 }
  0x2d   : > { %p2663_p0 = pnand %p2661_p13, %p3090_p8  ;;  %p2670_p7 = por %p2669_p4, %p2668_p5 }
  0x2f   : > { %p2664_p2 = pneg %p2663_p0 }
  0x31   : > { %p2671_p9 = pnand %p2670_p7, %p2664_p2 }
  0x33   : > { %2674 = shalt.err (!%p2671_p9)
}
  0x34   : > { %s3624_s17 = smov 128   ;;  %s3626_s21 = smov 8  }
  0x35   : > { %2542 = dma.hbm_to_vmem [thread:$0]  (!%p3076_p6), %s3657_s3, 512, %s3065_s18, [#allocation9], %s3624_s17, %s3624_s17, %s3626_s21  }
  0x36   : > { %s3659_s5 = sld [smem:[#allocation30_spill]] }
  0x3c   : > { %s2675_s28 = scalar_lea.hbm %s3659_s5, 512 }
  0x3d   : > { %p2676_p4 = scmp.ne.s32.totalorder %s3659_s5, %s2675_s28  ;;  %p2682_p12 = scmp.lt.u32.totalorder %s2675_s28, %s3659_s5 }
  0x3f   : > { %p2678_p10 = pnand %p2676_p4, %p3090_p8 }
  0x41   : > { %p2679_p11 = pneg %p2678_p10 }
  0x43   : > { %p2684_p13 = pnand %p2682_p12, %p2679_p11 }
  0x45   : > { %2687 = shalt.err (!%p2684_p13)
}
  0x46   : > { %s2688_s18 = scalar_lea.vmem %s3080_s22, 512  ;;  %p2696_p7 = scmp.lt.s32.totalorder %s3080_s22, %s3080_s22 }
  0x47   : > { %p2689_p0 = scmp.ne.s32.totalorder %s3080_s22, %s2688_s18  ;;  %p2697_p9 = scmp.lt.s32.totalorder %s2688_s18, %s2688_s18 }
  0x49   : > { %p2691_p2 = pnand %p2689_p0, %p3090_p8  ;;  %p2698_p4 = por %p2697_p9, %p2696_p7 }
  0x4b   : > { %p2692_p5 = pneg %p2691_p2 }
  0x4d   : > { %p2699_p10 = pnand %p2698_p4, %p2692_p5 }
  0x4f   : > { %2702 = shalt.err (!%p2699_p10)
}
  0x50   : > { %2548 = dma.hbm_to_vmem [thread:$0]  (!%p3076_p6), %s3659_s5, 512, %s3080_s22, [#allocation12], %s3624_s17, %s3624_s17, %s3626_s21  }
  0x51   : > { %s2312_s25 = sadd.s32 4294967294, %s2959_s16   ;;  %s3142_s26 = sadd.s32 1, %s2959_s16  }
  0x52   : > { %3660 = sst [smem:[#allocation25_spill]] %s3142_s26  ;;  %s39_s27 = ssub.s32 %s2959_s16, %s3142_s26 }
  0x53   : > { %s42_s28 = sadd.s32 1, %s2955_s15  ;;  %p40_p11 = scmp.eq.s32.totalorder %s39_s27, 0 }
  0x54   : > { %p49_p12 = scmp.ne.s32.totalorder %s2955_s15, %s2951_s14  ;;  %p50_p13 = scmp.eq.s32.totalorder %s2959_s16, 0 }
  0x55   : > { %p55_p0 = scmp.ne.s32.totalorder %s2951_s14, %s2947_s13  ;;  %p257_p7 = scmp.eq.s32.totalorder %s3060_s19, 1 }
  0x56   : > { %s3153_s30 = scalar_select %p40_p11, %s2955_s15, %s42_s28  }
  0x57   : > { %p51_p2 = por %p50_p13, %p49_p12  ;;  %p3157_p5 = por %p3634_p1, %p55_p0 }
  0x58   : > { %3661 = sst [smem:[#allocation26_spill]] %s3153_s30  ;;  %p263_p9 = scmp.eq.s32.totalorder %s2312_s25, 1 }
  0x59   : > { %s3662_s11 = scalar_select %p3157_p5, 1, 0 }
  0x5a   : > { %p2573_p4 = scmp.lt.s32.totalorder %s2959_s16, 2  ;;  %s3628_s22 = sand.u32 1, %s2955_s15  }
  0x5b   : > { %p3164_p10 = por %p257_p7, %p49_p12  ;;  %p3168_p3 = por %p263_p9, %p55_p0 }
  0x5c   : > { %s3174_s9 = sshll.u32 %s3628_s22, 3  ;;  %s3177_s24 = sshll.u32 %s2959_s16, 7 }
  0x5d   : > { %s3663_s12 = scalar_select %p3164_p10, 1, 0 }
  0x5e   : > { %s3664_s18 = scalar_select %p3168_p3, 1, 0 }
  0x5f   : > { %p3179_p11 = pnand %p2573_p4, %p51_p2  ;;  %s385_s25 = sand.u32 1, %s2959_s16  }
  0x60   : > { %3665 = sst [smem:[#allocation27_spill]] %s3664_s18  ;;  %s3667_s1 = sld [smem:[#allocation28_spill]] }
  0x61   : > { %s3666_s27 = scalar_select %p3179_p11, 1, 0 }
  0x62   : > { %s389_s22 = scalar_lea.vmem [#allocation5], %s3174_s9  ;;  %s2965_s5 = smov [#allocation10]  }
  0x63   : > { %s396_s3 = sshll.u32 %s389_s22, 4  ;;  %s3193_s30 = sshll.u32 %s2965_s5, 4  ;;  %s3191_s3 = int_to_ptr.vmem [resolvable:$true] %s396_s3  ;;  %s322_s30 = int_to_ptr.vmem [resolvable:$true] %s3193_s30 }
  0x64   : > { %s3195_s26 = scalar_lea.sflag [#allocation6], %s385_s25  ;;  %p3201_p13 = pneg %p3179_p11 }
  0x66   : > { %s3188_s21 = scalar_lea.hbm %s3667_s1, %s3177_s24  ;;  %s2708_s16 = scalar_lea.hbm %s3667_s1, 256 }
  0x67   : > { %s2703_s18 = scalar_lea.hbm %s3188_s21, 128  ;;  %p2709_p7 = scmp.lt.u32.totalorder %s3188_s21, %s3667_s1 }
  0x68   : > { %p2704_p12 = scmp.ne.s32.totalorder %s3188_s21, %s2703_s18  ;;  %p2710_p9 = scmp.lt.u32.totalorder %s2708_s16, %s2703_s18 }
  0x69   : > { %s3668_s17 = scalar_select %p3201_p13, 1, 0 }
  0x6a   : > { %p2706_p0 = pnand %p3201_p13, %p2704_p12  ;;  %p2711_p4 = por %p2710_p9, %p2709_p7 }
  0x6b   : > { %p2712_p1 = scmp.lt.u32.totalorder %s2703_s18, %s3188_s21 }
  0x6c   : > { %p2707_p2 = pneg %p2706_p0 }
  0x6d   : > { %p2713_p3 = por %p2712_p1, %p2711_p4 }
  0x6f   : > { %p2714_p10 = pnand %p2713_p3, %p2707_p2 }
  0x71   : > { %2717 = shalt.err (!%p2714_p10)
}
  0x72   : > { %s2718_s25 = scalar_lea.vmem %s3191_s3, 128  ;;  %s2966_s28 = smov [#allocation5]  }
  0x73   : > { %p2719_p12 = scmp.ne.s32.totalorder %s3191_s3, %s2718_s25  ;;  %s2723_s22 = sshll.u32 %s2966_s28, 4  ;;  %s2724_s22 = int_to_ptr.vmem [resolvable:$false] %s2723_s22 }
  0x74   : > { %s2725_s13 = scalar_lea.vmem %s2724_s22, 256  ;;  %p2726_p6 = scmp.lt.s32.totalorder %s3191_s3, %s2724_s22 }
  0x75   : > { %p2721_p0 = pnand %p2719_p12, %p3201_p13  ;;  %p2727_p8 = scmp.lt.s32.totalorder %s2725_s13, %s2718_s25 }
  0x77   : > { %p2722_p5 = pneg %p2721_p0  ;;  %p2728_p7 = por %p2727_p8, %p2726_p6 }
  0x79   : > { %p2729_p9 = pnand %p2728_p7, %p2722_p5 }
  0x7b   : > { %2732 = shalt.err (!%p2729_p9)
}
  0x7c   : > { %2558 = dma.hbm_to_vmem [thread:$0]  (!%p3179_p11), %s3188_s21, 128, %s3191_s3, %s3195_s26  }
  0x7d   : > { %s2733_s5 = scalar_lea.hbm %s3615_s4, 512  ;;  %p3669_p3 = scmp.ne.s32.totalorder %s3658_s29, 0 }
  0x7e   : > { %p2734_p1 = scmp.ne.s32.totalorder %s3615_s4, %s2733_s5  ;;  %p2740_p5 = scmp.lt.u32.totalorder %s2733_s5, %s3615_s4 }
  0x80   : > { %p2736_p6 = pnand %p2734_p1, %p3669_p3 }
  0x82   : > { %p2737_p8 = pneg %p2736_p6 }
  0x84   : > { %p2742_p10 = pnand %p2740_p5, %p2737_p8 }
  0x86   : > { %2745 = shalt.err (!%p2742_p10)
}
  0x87   : > { %s2746_s13 = scalar_lea.vmem %s322_s30, 512  ;;  %p2754_p0 = scmp.lt.s32.totalorder %s322_s30, %s322_s30 }
  0x88   : > { %p2747_p2 = scmp.ne.s32.totalorder %s322_s30, %s2746_s13  ;;  %p2755_p7 = scmp.lt.s32.totalorder %s2746_s13, %s2746_s13 }
  0x8a   : > { %p2749_p4 = pnand %p2747_p2, %p3669_p3  ;;  %p2756_p9 = por %p2755_p7, %p2754_p0 }
  0x8c   : > { %p2750_p12 = pneg %p2749_p4 }
  0x8e   : > { %p2757_p11 = pnand %p2756_p9, %p2750_p12 }
  0x90   : > { %2760 = shalt.err (!%p2757_p11)
}
  0x91   : > { %p3670_p1 = scmp.ne.s32.totalorder %s3656_s23, 0  ;;  %s3671_s1 = smov 8  }
  0x92   : > { %s3672_s3 = smov 128   ;;  %s2967_s18 = smov [#allocation13]  }
  0x93   : > { %2545 = dma.hbm_to_vmem [thread:$0]  (!%p3670_p1), %s3615_s4, 512, %s322_s30, [#allocation9], %s3672_s3, %s3672_s3, %s3671_s1  }
  0x94   : > { %s347_s5 = sshll.u32 %s2967_s18, 4  ;;  %s2761_s22 = scalar_lea.hbm %s3617_s6, 512  ;;  %s348_s5 = int_to_ptr.vmem [resolvable:$true] %s347_s5 }
  0x95   : > { %p2762_p11 = scmp.ne.s32.totalorder %s3617_s6, %s2761_s22  ;;  %p2768_p5 = scmp.lt.u32.totalorder %s2761_s22, %s3617_s6 }
  0x97   : > { %p2764_p6 = pnand %p2762_p11, %p3669_p3 }
  0x99   : > { %p2765_p8 = pneg %p2764_p6 }
  0x9b   : > { %p2770_p10 = pnand %p2768_p5, %p2765_p8 }
  0x9d   : > { %2773 = shalt.err (!%p2770_p10)
}
  0x9e   : > { %s2774_s30 = scalar_lea.vmem %s348_s5, 512  ;;  %p2782_p0 = scmp.lt.s32.totalorder %s348_s5, %s348_s5 }
  0x9f   : > { %p2775_p2 = scmp.ne.s32.totalorder %s348_s5, %s2774_s30  ;;  %p2783_p7 = scmp.lt.s32.totalorder %s2774_s30, %s2774_s30 }
  0xa1   : > { %p2777_p4 = pnand %p2775_p2, %p3669_p3  ;;  %p2784_p9 = por %p2783_p7, %p2782_p0 }
  0xa3   : > { %p2778_p12 = pneg %p2777_p4 }
  0xa5   : > { %p2785_p13 = pnand %p2784_p9, %p2778_p12 }
  0xa7   : > { %2788 = shalt.err (!%p2785_p13)
}
  0xa8   : > { %2551 = dma.hbm_to_vmem [thread:$0]  (!%p3670_p1), %s3617_s6, 512, %s348_s5, [#allocation12], %s3672_s3, %s3672_s3, %s3671_s1  }
  0xa9   : > { %s3272_s21 = scalar_lea.hbm %s3611_s0, %s3177_s24  ;;  %s371_s23 = scalar_lea.vmem [#allocation2], %s3174_s9 }
  0xaa   : > { %s378_s16 = sshll.u32 %s371_s23, 4  ;;  %s3673_s18 = sand.u32 1, %s2955_s15   ;;  %s379_s16 = int_to_ptr.vmem [resolvable:$true] %s378_s16 }
  0xab   : > { %s368_s28 = scalar_lea.sflag [#allocation3], %s3673_s18  ;;  %s2789_s25 = scalar_lea.hbm %s3272_s21, 128 }
  0xac   : > { %p2790_p13 = scmp.ne.s32.totalorder %s3272_s21, %s2789_s25  ;;  %p3674_p3 = scmp.ne.s32.totalorder %s3668_s17, 0 }
  0xad   : > { %s2794_s5 = scalar_lea.hbm %s3611_s0, 256  ;;  %p2795_p1 = scmp.lt.u32.totalorder %s3272_s21, %s3611_s0 }
  0xae   : > { %p2792_p11 = pnand %p2790_p13, %p3674_p3  ;;  %p2796_p8 = scmp.lt.u32.totalorder %s2794_s5, %s2789_s25 }
  0xaf   : > { %p2798_p10 = scmp.lt.u32.totalorder %s2789_s25, %s3272_s21 }
  0xb0   : > { %p2793_p6 = pneg %p2792_p11  ;;  %p2797_p5 = por %p2796_p8, %p2795_p1 }
  0xb2   : > { %p2799_p2 = por %p2798_p10, %p2797_p5 }
  0xb4   : > { %p2800_p4 = pnand %p2799_p2, %p2793_p6 }
  0xb6   : > { %2803 = shalt.err (!%p2800_p4)
}
  0xb7   : > { %s2804_s30 = scalar_lea.vmem %s379_s16, 128  ;;  %s2968_s7 = smov [#allocation2]  }
  0xb8   : > { %p2805_p12 = scmp.ne.s32.totalorder %s379_s16, %s2804_s30  ;;  %s2809_s8 = sshll.u32 %s2968_s7, 4  ;;  %s2810_s8 = int_to_ptr.vmem [resolvable:$false] %s2809_s8 }
  0xb9   : > { %s2811_s10 = scalar_lea.vmem %s2810_s8, 256  ;;  %p2812_p9 = scmp.lt.s32.totalorder %s379_s16, %s2810_s8 }
  0xba   : > { %p2807_p0 = pnand %p2805_p12, %p3674_p3  ;;  %p2813_p13 = scmp.lt.s32.totalorder %s2811_s10, %s2804_s30 }
  0xbc   : > { %p2808_p7 = pneg %p2807_p0  ;;  %p2814_p11 = por %p2813_p13, %p2812_p9 }
  0xbe   : > { %p2815_p1 = pnand %p2814_p11, %p2808_p7 }
  0xc0   : > { %2818 = shalt.err (!%p2815_p1)
}
  0xc1   : > { %p3675_p8 = scmp.ne.s32.totalorder %s3666_s27, 0  ;;  %s3298_s18 = scalar_lea.hbm %s3613_s2, %s3177_s24 }
  0xc2   : > { %s407_s25 = scalar_lea.vmem [#allocation7], %s3174_s9  ;;  %s2819_s3 = scalar_lea.hbm %s3298_s18, 128 }
  0xc3   : > { %2555 = dma.hbm_to_vmem [thread:$0]  (!%p3675_p8), %s3272_s21, 128, %s379_s16, %s368_s28  }
  0xc4   : > { %s414_s1 = sshll.u32 %s407_s25, 4  ;;  %p2820_p6 = scmp.ne.s32.totalorder %s3298_s18, %s2819_s3  ;;  %s415_s1 = int_to_ptr.vmem [resolvable:$true] %s414_s1 }
  0xc5   : > { %s2824_s21 = scalar_lea.hbm %s3613_s2, 256  ;;  %p2825_p2 = scmp.lt.u32.totalorder %s3298_s18, %s3613_s2 }
  0xc6   : > { %p2822_p5 = pnand %p2820_p6, %p3674_p3  ;;  %p2826_p4 = scmp.lt.u32.totalorder %s2824_s21, %s2819_s3 }
  0xc7   : > { %p2828_p0 = scmp.lt.u32.totalorder %s2819_s3, %s3298_s18 }
  0xc8   : > { %p2823_p10 = pneg %p2822_p5  ;;  %p2827_p12 = por %p2826_p4, %p2825_p2 }
  0xca   : > { %p2829_p7 = por %p2828_p0, %p2827_p12 }
  0xcc   : > { %p2830_p9 = pnand %p2829_p7, %p2823_p10 }
  0xce   : > { %2833 = shalt.err (!%p2830_p9)
}
  0xcf   : > { %s2834_s9 = scalar_lea.vmem %s415_s1, 128  ;;  %s2969_s24 = smov [#allocation7]  }
  0xd0   : > { %p2835_p13 = scmp.ne.s32.totalorder %s415_s1, %s2834_s9  ;;  %s2839_s13 = sshll.u32 %s2969_s24, 4  ;;  %s2840_s13 = int_to_ptr.vmem [resolvable:$false] %s2839_s13 }
  0xd1   : > { %s2841_s30 = scalar_lea.vmem %s2840_s13, 256  ;;  %p2842_p6 = scmp.lt.s32.totalorder %s415_s1, %s2840_s13 }
  0xd2   : > { %p2837_p11 = pnand %p2835_p13, %p3674_p3  ;;  %p2843_p5 = scmp.lt.s32.totalorder %s2841_s30, %s2834_s9 }
  0xd4   : > { %p2838_p1 = pneg %p2837_p11  ;;  %p2844_p8 = por %p2843_p5, %p2842_p6 }
  0xd6   : > { %p2845_p2 = pnand %p2844_p8, %p2838_p1 }
  0xd8   : > { %2848 = shalt.err (!%p2845_p2)
}
  0xd9   : > { %p3676_p4 = scmp.ne.s32.totalorder %s3666_s27, 0  ;;  %p3677_p10 = scmp.ne.s32.totalorder %s3655_s20, 0 }
  0xda   : > { %s3322_s17 = sand.u32 (!%p3677_p10), 1, %s2951_s14   ;;  %p3678_p3 = scmp.ne.s32.totalorder (!%p3677_p10), %s3662_s11, 0 }
  0xdb   : > { %2561 = dma.hbm_to_vmem [thread:$0]  (!%p3676_p4), %s3298_s18, 128, %s415_s1, %s3195_s26  }
  0xdc   : > { %423 = sbr.rel (%p3677_p10) target bundleno = 2044 (0x7fc), region = 56  ;;  %s3325_s7 = sshll.u32 (!%p3677_p10), %s3322_s17, 3 }
  0xdd   : > { %s426_s8 = scalar_lea.sflag (!%p3677_p10), [#allocation3], %s3322_s17  ;;  %s429_s10 = scalar_lea.vmem (!%p3677_p10), [#allocation2], %s3325_s7 }
  0xe3   : > { %2922 = dma.done.wait (%p3678_p3), %s426_s8, 128  }
  0xe4   : > { %2924 = vsyncadd (%p3678_p3), %s426_s8, 4294967168  ;;  %s434_s20 = sand.u32 1, %s3060_s19   ;;  %s438_s27 = scalar_lea.vmem [#allocation5], %s3325_s7 }
  0xe5   : > { %s435_s26 = scalar_lea.sflag [#allocation6], %s434_s20 }
  0xe6   : > { %2926 = dma.done.wait (%p3678_p3), %s435_s26, 256  }
  0xe7   : > { %2928 = vsyncadd (%p3678_p3), %s435_s26, 4294967040  ;;  %s447_s29 = scalar_lea.vmem [#allocation7], %s3325_s7  ;;  %p3679_p8 = scmp.eq.s32.totalorder %s3060_s19, 0 }
  0xe9   : > { %2930 = dma.done.wait (%p3679_p8), [#allocation9], 1024   ;;  %p3680_p12 = pmov %p3679_p8 }
  0xea   : > { %p3681_p0 = pmov %p3679_p8 }
  0xeb   : > { %2932 = vsyncadd (%p3680_p12), [#allocation9], 4294966272 }
  0xec   : > { %2934 = dma.done.wait (%p3681_p0), [#allocation12], 1024   ;;  %p3682_p7 = pmov %p3681_p0 }
  0xed   : > { %v2970_v0 = vmov 0.0|0.0   ;;  %vm2971_vm0 = vmmov 0   ;;  %v2972_v1 = vmov 0.0   ;;  %v596_v2 = vld [vmem:[#allocation10] sm:$0xff]  ;;  %v597_v3 = vld [vmem:[#allocation10 + $0x8] sm:$0xff]  ;;  %v598_v7 = vld [vmem:[#allocation10 + $0x10] sm:$0xff]  ;;  %v765_v29 = vlaneseq }
  0xee   : > { %2936 = vsyncadd (%p3682_p7), [#allocation12], 4294966272  ;;  %2495 = vmatprep.subr.bf16.mxu1 %v2970_v0  ;;  %2489 = vmatprep.subr.bf16.mxu0 %v2970_v0  ;;  %v518_v4 = vld [vmem:[#allocation8] sm:$0xff]  ;;  %v2496_v5 = vpack.c.bf16 %v597_v3, %v596_v2  ;;  %v519_v6 = vld [vmem:[#allocation8 + $0x8] sm:$0xff]  ;;  %vm522_vm1 = vcmask 261120   ;;  %s2973_s11 = smov 104  }
  0xef   : > { %2424 = vmatprep.mubr.msk.f32.mxu1 %vm2971_vm0, %v2972_v1  ;;  %2413 = vmatprep.mubr.msk.f32.mxu0 %vm2971_vm0, %v2972_v1  ;;  %v599_v8 = vld [vmem:[#allocation10 + $0x18] sm:$0xff]  ;;  %v2490_v9 = vpack.c.bf16 %v519_v6, %v518_v4  ;;  %v520_v10 = vld [vmem:[#allocation8 + $0x10] sm:$0xff]  ;;  %v516_v14 = vld [vmem:[%s438_s27] sm:$0xff]  ;;  %s2974_s23 = smov 120   ;;  %s2975_s18 = smov 112   ;;  %v766_v33 = vshrl.u32 %v765_v29, 7 }
  0xf0   : > { %v521_v11 = vld [vmem:[#allocation8 + $0x18] sm:$0xff]  ;;  %2497 = vmatpush3.bf16.msra.mxu1 %v2496_v5  ;;  %v2499_v12 = vpack.c.bf16 %v599_v8, %v598_v7  ;;  %v673_v20 = vld [vmem:[#allocation11] sm:$0xff]  ;;  %v674_v21 = vld [vmem:[#allocation11 + $0x8] sm:$0xff]  ;;  %v2976_v27 = vmov 1983009808   ;;  %vm1188_vm2 = vcmask 64512  }
  0xf1   : > { %2491 = vmatpush3.bf16.msra.mxu0 %v2490_v9  ;;  %2498 = vmatprep.subr.bf16.mxu1 %v2970_v0  ;;  %v2493_v13 = vpack.c.bf16 %v521_v11, %v520_v10  ;;  %v3360_v15 = vld [vmem:[%s429_s10] sm:$0xff]  ;;  %v2502_v23 = vpack.c.bf16 %v674_v21, %v673_v20  ;;  %v763_v28 = vunpack.c.l.s4 %v2976_v27  ;;  %v2977_v30 = vmov 1934713408   ;;  %s2334_s25 = sshll.u32 %s3322_s17, 5  ;;  %s2978_s3 = smov 16  }
  0xf2   : > { %2492 = vmatprep.subr.bf16.mxu0 %v2970_v0  ;;  %v675_v22 = vld [vmem:[#allocation11 + $0x10] sm:$0xff]  ;;  %v676_v24 = vld [vmem:[#allocation11 + $0x18] sm:$0xff]  ;;  %v795_v31 = vunpack.c.l.s4 %v2977_v30  ;;  %s3457_s1 = scalar_lea.vmem [#allocation15], %s2334_s25  ;;  %s2979_s5 = smov 8   ;;  %vm1982_vm3 = vcmask 130048   ;;  %vm1984_vm4 = vcmask 195584  }
  0xf3   : > { %v2505_v25 = vpack.c.bf16 %v676_v24, %v675_v22  ;;  %v517_v26 = vld [vmem:[%s447_s29] sm:$0xff]  ;;  %v764_v32 = vunpack.c.0.s8 %v763_v28  ;;  %s2980_s22 = smov 24   ;;  %s2368_s21 = sshll.u32 %s3060_s19, 9 }
  0xf4   : > { %2500 = vmatpush3.bf16.msra.mxu1 %v2499_v12  ;;  %v796_v36 = vunpack.c.0.s8 %v795_v31  ;;  %s2126_s16 = sshll.u32 %s3457_s1, 4  ;;  %s3683_s24 = sld [smem:[#allocation34_spill]]  ;;  %s3528_s16 = int_to_ptr.vmem [resolvable:$true] %s2126_s16 }
  0xf5   : > { %2494 = vmatpush3.bf16.msra.mxu0 %v2493_v13  ;;  %2438 = vmatprep.subr.mxu1 %v2972_v1  ;;  %v3384_v37 = vsub.s32 %v764_v32, %v766_v33  ;;  %s2100_s30 = scalar_lea.sflag [#allocation16], %s3322_s17  ;;  %s2849_s8 = scalar_lea.vmem %s3528_s16, 512 }
  0xf6   : > { %2501 = vmatprep.subr.bf16.mxu0 %v2970_v0  ;;  %v3386_v44 = vsub.s32 %v796_v36, %v766_v33  ;;  %p2850_p9 = scmp.ne.s32.totalorder %s3528_s16, %s2849_s8  ;;  %p3684_p13 = scmp.ne.s32.totalorder %s3663_s12, 0 }
  0xf7   : > { %2425 = vmatmul.mubr.msk.f32.vlgmr.msra.gmra.mrb[0].mxu1 %vm522_vm1, %v516_v14  ;;  %s2981_s10 = smov [#allocation15]  }
  0xf8   : > { %2414 = vmatmul.mubr.msk.f32.vlgmr.msra.gmra.mrb[0].mxu0 %vm522_vm1, %v3360_v15  ;;  %2440 = vmatprep.mubr.msk.f32.mxu1 %vm2971_vm0, %v2972_v1  ;;  %p2851_p11 = pnand %p2850_p9, %p3684_p13  ;;  %s2853_s20 = sshll.u32 %s2981_s10, 4  ;;  %s2854_s20 = int_to_ptr.vmem [resolvable:$false] %s2853_s20 }
  0xf9   : > { %2435 = vmatprep.mubr.msk.f32.mxu0 %vm2971_vm0, %v2972_v1  ;;  %2503 = vmatpush3.bf16.msra.mxu0 %v2502_v23  ;;  %s2855_s26 = scalar_lea.vmem %s2854_s20, 1024  ;;  %p2856_p6 = scmp.lt.s32.totalorder %s3528_s16, %s2854_s20 }
  0xfa   : > { %2504 = vmatprep.subr.bf16.mxu0 %v2970_v0  ;;  %s3526_s13 = scalar_lea.hbm %s3683_s24, %s2368_s21  ;;  %p2852_p1 = pneg %p2851_p11 }
  0xfb   : > { %p2857_p5 = scmp.lt.s32.totalorder %s2855_s26, %s2849_s8 }
  0xfd   : > { %2506 = vmatpush3.bf16.msra.mxu0 %v2505_v25  ;;  %p2858_p2 = por %p2857_p5, %p2856_p6 }
  0xfe   : > { %2458 = vmatprep.subr.mxu0 %v2972_v1 }
  0xff   : > { %p2859_p4 = pnand %p2858_p2, %p2852_p1 }
 0x100   : > { %2436 = vmatmul.mubr.msk.f32.vlgmr.msra.gmra.mrb[2].mxu0 %vm522_vm1, %v517_v26 }
 0x101   : > { %2460 = vmatprep.mubr.msk.f32.mxu0 %vm2971_vm0, %v2972_v1 }
 0x1ca   : > { %v669_v16 = vpop.f32.mrb[0].mxu1 }
 0x1cb   : > { %903 = vrot.lane.b32.xlu1 %v669_v16, %s2973_s11  ;;  %897 = vrot.lane.b32.xlu0 %v669_v16, %s2974_s23  ;;  %v2426_v17 = vpop.f32.mrb[1].mxu1  ;;  %v592_v18 = vpop.f32.mrb[0].mxu0 }
 0x1cc   : > { %v2415_v19 = vpop.f32.mrb[1].mxu0 }
 0x1cf   : > { %900 = vrot.lane.b32.xlu0 %v669_v16, %s2975_s18  ;;  %751 = vrot.lane.b32.xlu1 %v592_v18, %s2974_s23 }
 0x1d3   : > { %754 = vrot.lane.b32.xlu0 %v592_v18, %s2975_s18  ;;  %757 = vrot.lane.b32.xlu1 %v592_v18, %s2973_s11 }
 0x23d   : > { %v904_v34 = vpop.permute.xlu1 %903  ;;  %v898_v35 = vpop.permute.xlu0 %897 }
 0x23e   : > { %v922_v38 = vcombine.low %v898_v35, %v904_v34  ;;  %v923_v39 = vcombine.high %v898_v35, %v904_v34 }
 0x240   : > { %v930_v45 = vrot.slane %v922_v38, %v3384_v37  ;;  %v937_v46 = vrot.slane %v923_v39, %v3384_v37 }
 0x241   : > { %v901_v40 = vpop.permute.xlu0 %900  ;;  %v752_v41 = vpop.permute.xlu1 %751 }
 0x242   : > { %v906_v42 = vcombine.low %v669_v16, %v901_v40  ;;  %v907_v43 = vcombine.high %v669_v16, %v901_v40 }
 0x244   : > { %v914_v47 = vrot.slane %v906_v42, %v3384_v37  ;;  %v921_v48 = vrot.slane %v907_v43, %v3384_v37 }
 0x245   : > { %v755_v49 = vpop.permute.xlu0 %754  ;;  %v758_v50 = vpop.permute.xlu1 %757 }
 0x246   : > { %v938_v51 = vcombine.low %v914_v47, %v930_v45  ;;  %v939_v52 = vcombine.high %v914_v47, %v930_v45  ;;  %v954_v53 = vcombine.low %v921_v48, %v937_v46  ;;  %v955_v54 = vcombine.high %v921_v48, %v937_v46 }
 0x247   : > { %v760_v55 = vcombine.low %v592_v18, %v755_v49  ;;  %v761_v56 = vcombine.high %v592_v18, %v755_v49  ;;  %v776_v57 = vcombine.low %v752_v41, %v758_v50  ;;  %v777_v58 = vcombine.high %v752_v41, %v758_v50 }
 0x248   : > { %v946_v59 = vrot.slane %v938_v51, %v3386_v44  ;;  %v953_v60 = vrot.slane %v939_v52, %v3386_v44  ;;  %v962_v61 = vrot.slane %v954_v53, %v3386_v44  ;;  %v969_v62 = vrot.slane %v955_v54, %v3386_v44 }
 0x249   : > { %v768_v63 = vrot.slane %v760_v55, %v3384_v37  ;;  %v775_v2 = vrot.slane %v761_v56, %v3384_v37  ;;  %v784_v3 = vrot.slane %v776_v57, %v3384_v37  ;;  %v791_v4 = vrot.slane %v777_v58, %v3384_v37  ;;  %v3440_v56 = vpop.f32.mrb[2].mxu0 }
 0x24a   : > { %v974_v5 = vcombine.low %v946_v59, %v953_v60  ;;  %v2340_v6 = vcombine.high %v946_v59, %v953_v60  ;;  %v990_v7 = vcombine.low %v962_v61, %v969_v62  ;;  %v2341_v8 = vcombine.high %v962_v61, %v969_v62  ;;  %v2437_v57 = vpop.f32.mrb[3].mxu0 }
 0x24b   : > { %v792_v9 = vcombine.low %v768_v63, %v784_v3  ;;  %v793_v10 = vcombine.high %v768_v63, %v784_v3  ;;  %v808_v11 = vcombine.low %v775_v2, %v791_v4  ;;  %v809_v12 = vcombine.high %v775_v2, %v791_v4 }
 0x24c   : > { %v981_v13 = vrot.slane %v974_v5, %v3384_v37  ;;  %v989_v14 = vrot.slane %v2340_v6, %v3384_v37  ;;  %v997_v16 = vrot.slane %v990_v7, %v3384_v37  ;;  %v1005_v17 = vrot.slane %v2341_v8, %v3384_v37 }
 0x24d   : > { %v800_v18 = vrot.slane %v792_v9, %v3386_v44  ;;  %v807_v19 = vrot.slane %v793_v10, %v3386_v44  ;;  %v816_v20 = vrot.slane %v808_v11, %v3386_v44  ;;  %v823_v21 = vrot.slane %v809_v12, %v3386_v44 }
 0x24e   : > { %v1006_v22 = vcombine.low %v981_v13, %v989_v14  ;;  %v1022_v23 = vcombine.low %v997_v16, %v1005_v17  ;;  %v1007_v38 = vcombine.high %v981_v13, %v989_v14  ;;  %v1023_v39 = vcombine.high %v997_v16, %v1005_v17 }
 0x24f   : > { %v828_v24 = vcombine.low %v800_v18, %v807_v19  ;;  %v2338_v25 = vcombine.high %v800_v18, %v807_v19  ;;  %v844_v26 = vcombine.low %v816_v20, %v823_v21  ;;  %v2339_v27 = vcombine.high %v816_v20, %v823_v21 }
 0x250   : > { %v1014_v28 = vrot.slane %v1006_v22, %v3386_v44  ;;  %v1030_v29 = vrot.slane %v1022_v23, %v3386_v44  ;;  %v1021_v47 = vrot.slane %v1007_v38, %v3386_v44  ;;  %v1037_v48 = vrot.slane %v1023_v39, %v3386_v44 }
 0x251   : > { %v835_v30 = vrot.slane %v828_v24, %v3384_v37  ;;  %v843_v31 = vrot.slane %v2338_v25, %v3384_v37  ;;  %v851_v32 = vrot.slane %v844_v26, %v3384_v37  ;;  %v859_v33 = vrot.slane %v2339_v27, %v3384_v37 }
 0x252   : > { %v1038_v34 = vcombine.low %v1014_v28, %v1030_v29  ;;  %v1039_v46 = vcombine.high %v1014_v28, %v1030_v29  ;;  %v1040_v52 = vcombine.low %v1021_v47, %v1037_v48  ;;  %v1041_v54 = vcombine.high %v1021_v47, %v1037_v48 }
 0x253   : > { %v860_v35 = vcombine.low %v835_v30, %v843_v31  ;;  %v876_v36 = vcombine.low %v851_v32, %v859_v33  ;;  %v861_v42 = vcombine.high %v835_v30, %v843_v31  ;;  %v877_v43 = vcombine.high %v851_v32, %v859_v33 }
 0x254   : > { %2439 = vmatpush3.xpose.msk.msra.mxu1 %vm1188_vm2, %v1038_v34 }
 0x255   : > { %2443 = vmatprep.subr.mxu1 %v2972_v1  ;;  %v868_v40 = vrot.slane %v860_v35, %v3386_v44  ;;  %v884_v41 = vrot.slane %v876_v36, %v3386_v44  ;;  %v875_v50 = vrot.slane %v861_v42, %v3386_v44  ;;  %v891_v51 = vrot.slane %v877_v43, %v3386_v44 }
 0x257   : > { %v892_v45 = vcombine.low %v868_v40, %v884_v41  ;;  %v893_v49 = vcombine.high %v868_v40, %v884_v41  ;;  %v894_v53 = vcombine.low %v875_v50, %v891_v51  ;;  %v895_v55 = vcombine.high %v875_v50, %v891_v51 }
 0x259   : > { %2441 = vmatmul.mubr.msk.f32.vlgmr.msra.gmra.mrb[2].mxu1 %vm1188_vm2, %v892_v45 }
 0x25a   : > { %2444 = vmatpush3.xpose.msk.msra.mxu1 %vm1188_vm2, %v1039_v46  ;;  %2445 = vmatprep.mubr.msk.f32.mxu1 %vm2971_vm0, %v2972_v1 }
 0x25b   : > { %2448 = vmatprep.subr.mxu1 %v2972_v1 }
 0x25d   : > { %2446 = vmatmul.mubr.msk.f32.vlgmr.msra.gmra.mrb[4].mxu1 %vm1188_vm2, %v893_v49 }
 0x25e   : > { %2449 = vmatpush3.xpose.msk.msra.mxu1 %vm1188_vm2, %v1040_v52  ;;  %2450 = vmatprep.mubr.msk.f32.mxu1 %vm2971_vm0, %v2972_v1 }
 0x25f   : > { %2453 = vmatprep.subr.mxu1 %v2972_v1 }
 0x261   : > { %2451 = vmatmul.mubr.msk.f32.vlgmr.msra.gmra.mrb[6].mxu1 %vm1188_vm2, %v894_v53 }
 0x262   : > { %2454 = vmatpush3.xpose.msk.msra.mxu1 %vm1188_vm2, %v1041_v54  ;;  %2455 = vmatprep.mubr.msk.f32.mxu1 %vm2971_vm0, %v2972_v1 }
 0x263   : > { %2463 = vmatprep.subr.mxu1 %v2972_v1 }
 0x265   : > { %2456 = vmatmul.mubr.msk.f32.vlgmr.msra.gmra.mrb[8].mxu1 %vm1188_vm2, %v895_v55 }
 0x266   : > { %2465 = vmatprep.mubr.msk.f32.mxu1 %vm2971_vm0, %v2972_v1 }
 0x32c   : > { %v1261_v58 = vpop.f32.mrb[2].mxu1 }
 0x32d   : > { %v2442_v59 = vpop.f32.mrb[3].mxu1  ;;  %v1493_v60 = vsel %vm1188_vm2, %v1261_v58, -inf }
 0x32e   : > { %1494 = vmax.xlane.f32.xlu0 %v1493_v60 }
 0x330   : > { %v1337_v61 = vpop.f32.mrb[4].mxu1 }
 0x331   : > { %v2447_v62 = vpop.f32.mrb[5].mxu1  ;;  %v1496_v63 = vsel %vm1188_vm2, %v1337_v61, -inf }
 0x332   : > { %1497 = vmax.xlane.f32.xlu1 %v1496_v63 }
 0x334   : > { %v1413_v2 = vpop.f32.mrb[6].mxu1 }
 0x335   : > { %v2452_v3 = vpop.f32.mrb[7].mxu1  ;;  %v1499_v4 = vsel %vm1188_vm2, %v1413_v2, -inf }
 0x336   : > { %1500 = vmax.xlane.f32.xlu0 %v1499_v4 }
 0x338   : > { %v1489_v5 = vpop.f32.mrb[8].mxu1 }
 0x339   : > { %v2457_v6 = vpop.f32.mrb[9].mxu1  ;;  %v1502_v7 = vsel %vm1188_vm2, %v1489_v5, -inf }
 0x33a   : > { %1503 = vmax.xlane.f32.xlu0 %v1502_v7 }
 0x343   : > { %1043 = vrot.lane.b32.xlu1 %v3440_v56, %s2974_s23 }
 0x3bb   : > { %v1495_v8 = vpop.xlane.xlu0 %1494 }
 0x3bc   : > { %v1505_v9 = vsub.f32 %v1261_v58, %v1495_v8 }
 0x3be   : > { %v1509_v10 = vmul.f32 1.442695, %v1505_v9 }
 0x3bf   : > { %v1498_v11 = vpop.xlane.xlu1 %1497 }
 0x3c0   : > { %2629 = vpow2.f32 %v1509_v10  ;;  %v1506_v12 = vsub.f32 %v1337_v61, %v1498_v11 }
 0x3c2   : > { %v1511_v13 = vmul.f32 1.442695, %v1506_v12 }
 0x3c3   : > { %v1501_v14 = vpop.xlane.xlu0 %1500  ;;  %v1044_v29 = vpop.permute.xlu1 %1043 }
 0x3c4   : > { %2631 = vpow2.f32 %v1511_v13  ;;  %v1507_v16 = vsub.f32 %v1413_v2, %v1501_v14 }
 0x3c6   : > { %v1513_v17 = vmul.f32 1.442695, %v1507_v16 }
 0x3c7   : > { %v1504_v18 = vpop.xlane.xlu0 %1503 }
 0x3c8   : > { %2633 = vpow2.f32 %v1513_v17  ;;  %v1508_v19 = vsub.f32 %v1489_v5, %v1504_v18 }
 0x3ca   : > { %v2630_v20 = vpop.eup %2629  ;;  %v1515_v21 = vmul.f32 1.442695, %v1508_v19 }
 0x3cb   : > { %v1517_v22 = vsel %vm1188_vm2, %v2630_v20, 0.0 }
 0x3cc   : > { %2635 = vpow2.f32 %v1515_v21  ;;  %1518 = vadd.xlane.f32.xlu1 %v1517_v22  ;;  %v1986_v21 = vld [vmem:[#allocation13] sm:$0xff]  ;;  %v1987_v22 = vld [vmem:[#allocation13 + $0x8] sm:$0xff] }
 0x3ce   : > { %v2632_v23 = vpop.eup %2631 }
 0x3cf   : > { %v1520_v24 = vsel %vm1188_vm2, %v2632_v23, 0.0 }
 0x3d0   : > { %1521 = vadd.xlane.f32.xlu0 %v1520_v24 }
 0x3d2   : > { %v2634_v25 = vpop.eup %2633 }
 0x3d3   : > { %v1523_v26 = vsel %vm1188_vm2, %v2634_v25, 0.0 }
 0x3d4   : > { %1524 = vadd.xlane.f32.xlu1 %v1523_v26 }
 0x3d6   : > { %v2636_v27 = vpop.eup %2635 }
 0x3d7   : > { %v1526_v28 = vsel %vm1188_vm2, %v2636_v27, 0.0 }
 0x3d8   : > { %1527 = vadd.xlane.f32.xlu0 %v1526_v28 }
 0x3e5   : > { %1049 = vrot.lane.b32.xlu1 %v3440_v56, %s2973_s11 }
 0x3ee   : > { %1046 = vrot.lane.b32.xlu0 %v3440_v56, %s2975_s18 }
 0x459   : > { %v1519_v30 = vpop.xlane.xlu1 %1518 }
 0x45a   : > { %2637 = vrcp.f32 %v1519_v30 }
 0x45d   : > { %v1522_v31 = vpop.xlane.xlu0 %1521 }
 0x45e   : > { %2639 = vrcp.f32 %v1522_v31 }
 0x461   : > { %v1525_v32 = vpop.xlane.xlu1 %1524 }
 0x462   : > { %2641 = vrcp.f32 %v1525_v32 }
 0x464   : > { %v2638_v33 = vpop.eup %2637 }
 0x465   : > { %v1530_v34 = vmul.f32 %v2638_v33, %v2630_v20  ;;  %v1528_v35 = vpop.xlane.xlu0 %1527  ;;  %v1050_v36 = vpop.permute.xlu1 %1049 }
 0x466   : > { %2643 = vrcp.f32 %v1528_v35  ;;  %v1068_v39 = vcombine.low %v1044_v29, %v1050_v36  ;;  %v1069_v40 = vcombine.high %v1044_v29, %v1050_v36 }
 0x467   : > { %1537 = vst.msk [vmem:[%s3457_s1] sm:$0xff] %vm1188_vm2, %v1530_v34 }
 0x468   : > { %v2640_v38 = vpop.eup %2639  ;;  %v1076_v47 = vrot.slane %v1068_v39, %v3384_v37  ;;  %v1083_v48 = vrot.slane %v1069_v40, %v3384_v37 }
 0x469   : > { %v1532_v41 = vmul.f32 %v2640_v38, %v2632_v23  ;;  %v1047_v42 = vpop.permute.xlu0 %1046  ;;  %v2508_v23 = vpack.c.bf16 %v1987_v22, %v1986_v21 }
 0x46a   : > { %v1052_v43 = vcombine.low %v3440_v56, %v1047_v42  ;;  %v1053_v45 = vcombine.high %v3440_v56, %v1047_v42 }
 0x46b   : > { %1538 = vst.msk [vmem:[%s3457_s1 + $0x8] sm:$0xff] %vm1188_vm2, %v1532_v41 }
 0x46c   : > { %v2642_v46 = vpop.eup %2641  ;;  %v1060_v49 = vrot.slane %v1052_v43, %v3384_v37  ;;  %v1067_v50 = vrot.slane %v1053_v45, %v3384_v37  ;;  %v1988_v43 = vld [vmem:[#allocation13 + $0x10] sm:$0xff]  ;;  %v1989_v45 = vld [vmem:[#allocation13 + $0x18] sm:$0xff] }
 0x46d   : > { %v1534_v51 = vmul.f32 %v2642_v46, %v2634_v25 }
 0x46e   : > { %v1084_v52 = vcombine.low %v1060_v49, %v1076_v47  ;;  %v1085_v53 = vcombine.high %v1060_v49, %v1076_v47  ;;  %v1100_v54 = vcombine.low %v1067_v50, %v1083_v48  ;;  %v1101_v55 = vcombine.high %v1067_v50, %v1083_v48 }
 0x46f   : > { %1539 = vst.msk [vmem:[%s3457_s1 + $0x10] sm:$0xff] %vm1188_vm2, %v1534_v51  ;;  %v2511_v50 = vpack.c.bf16 %v1989_v45, %v1988_v43 }
 0x470   : > { %v2644_v56 = vpop.eup %2643  ;;  %v1092_v57 = vrot.slane %v1084_v52, %v3386_v44  ;;  %v1099_v58 = vrot.slane %v1085_v53, %v3386_v44  ;;  %v1108_v59 = vrot.slane %v1100_v54, %v3386_v44  ;;  %v1115_v60 = vrot.slane %v1101_v55, %v3386_v44 }
 0x471   : > { %v1536_v61 = vmul.f32 %v2644_v56, %v2636_v27 }
 0x472   : > { %v1120_v62 = vcombine.low %v1092_v57, %v1099_v58  ;;  %v2342_v63 = vcombine.high %v1092_v57, %v1099_v58  ;;  %v1136_v2 = vcombine.low %v1108_v59, %v1115_v60  ;;  %v2343_v3 = vcombine.high %v1108_v59, %v1115_v60 }
 0x473   : > { %1540 = vst.msk [vmem:[%s3457_s1 + $0x18] sm:$0xff] %vm1188_vm2, %v1536_v61 }
 0x474   : > { %v1127_v4 = vrot.slane %v1120_v62, %v3384_v37  ;;  %v1135_v5 = vrot.slane %v2342_v63, %v3384_v37  ;;  %v1143_v6 = vrot.slane %v1136_v2, %v3384_v37  ;;  %v1151_v7 = vrot.slane %v2343_v3, %v3384_v37 }
 0x476   : > { %v1152_v8 = vcombine.low %v1127_v4, %v1135_v5  ;;  %v1168_v9 = vcombine.low %v1143_v6, %v1151_v7  ;;  %v1153_v10 = vcombine.high %v1127_v4, %v1135_v5  ;;  %v1169_v11 = vcombine.high %v1143_v6, %v1151_v7 }
 0x478   : > { %v1160_v12 = vrot.slane %v1152_v8, %v3386_v44  ;;  %v1176_v13 = vrot.slane %v1168_v9, %v3386_v44  ;;  %v1167_v14 = vrot.slane %v1153_v10, %v3386_v44  ;;  %v1183_v16 = vrot.slane %v1169_v11, %v3386_v44 }
 0x47a   : > { %v1184_v17 = vcombine.low %v1160_v12, %v1176_v13  ;;  %v1185_v18 = vcombine.high %v1160_v12, %v1176_v13  ;;  %v1186_v19 = vcombine.low %v1167_v14, %v1183_v16  ;;  %v1187_v20 = vcombine.high %v1167_v14, %v1183_v16 }
 0x47c   : > { %2459 = vmatpush3.msra.mxu0 %v1184_v17  ;;  %2464 = vmatpush3.msra.mxu1 %v1185_v18 }
 0x47d   : > { %2461 = vmatmul.mubr.msk.f32.vlgmr.msra.gmra.mrb[4].mxu0 %vm1188_vm2, %v1530_v34  ;;  %2466 = vmatmul.mubr.msk.f32.vlgmr.msra.gmra.mrb[10].mxu1 %vm1188_vm2, %v1532_v41 }
 0x47e   : > { %2468 = vmatprep.subr.mxu0 %v2972_v1  ;;  %2473 = vmatprep.subr.mxu1 %v2972_v1 }
 0x47f   : > { %2469 = vmatpush3.msra.mxu0 %v1186_v19  ;;  %2474 = vmatpush3.msra.mxu1 %v1187_v20 }
 0x480   : > { %2470 = vmatprep.mubr.msk.f32.mxu0 %vm2971_vm0, %v2972_v1  ;;  %2475 = vmatprep.mubr.msk.f32.mxu1 %vm2971_vm0, %v2972_v1 }
 0x481   : > { %2471 = vmatmul.mubr.msk.f32.vlgmr.msra.gmra.mrb[6].mxu0 %vm1188_vm2, %v1534_v51  ;;  %2476 = vmatmul.mubr.msk.f32.vlgmr.msra.gmra.mrb[12].mxu1 %vm1188_vm2, %v1536_v61 }
 0x482   : > { %2507 = vmatprep.subr.bf16.mxu0 %v2970_v0  ;;  %2486 = vmatprep.mubr.msk.f32.mxu0 %vm2971_vm0, %v2972_v1 }
 0x483   : > { %2509 = vmatpush3.bf16.msra.mxu0 %v2508_v23 }
 0x484   : > { %2510 = vmatprep.subr.bf16.mxu0 %v2970_v0 }
 0x487   : > { %2512 = vmatpush3.bf16.msra.mxu0 %v2511_v50 }
 0x550   : > { %v1610_v24 = vpop.f32.mrb[4].mxu0  ;;  %v1683_v25 = vpop.f32.mrb[10].mxu1 }
 0x551   : > { %v2462_v26 = vpop.f32.mrb[5].mxu0  ;;  %v2467_v27 = vpop.f32.mrb[11].mxu1 }
 0x554   : > { %v1756_v28 = vpop.f32.mrb[6].mxu0  ;;  %v1829_v29 = vpop.f32.mrb[12].mxu1 }
 0x555   : > { %v1833_v30 = vcombine.low %v1610_v24, %v1756_v28  ;;  %v1834_v31 = vcombine.high %v1610_v24, %v1756_v28  ;;  %v1849_v32 = vcombine.low %v1683_v25, %v1829_v29  ;;  %v1850_v33 = vcombine.high %v1683_v25, %v1829_v29  ;;  %v2472_v34 = vpop.f32.mrb[7].mxu0  ;;  %v2477_v35 = vpop.f32.mrb[13].mxu1 }
 0x557   : > { %v1841_v1 = vrot.slane %v1833_v30, %v3384_v37  ;;  %v1848_v36 = vrot.slane %v1834_v31, %v3384_v37  ;;  %v1857_v38 = vrot.slane %v1849_v32, %v3384_v37  ;;  %v1864_v0 = vrot.slane %v1850_v33, %v3384_v37 }
 0x559   : > { %v1865_v39 = vcombine.low %v1841_v1, %v1857_v38  ;;  %v1866_v40 = vcombine.high %v1841_v1, %v1857_v38  ;;  %v1881_v41 = vcombine.low %v1848_v36, %v1864_v0  ;;  %v1882_v42 = vcombine.high %v1848_v36, %v1864_v0 }
 0x55b   : > { %v1873_v46 = vrot.slane %v1865_v39, %v3386_v44  ;;  %v1880_v47 = vrot.slane %v1866_v40, %v3386_v44  ;;  %v1889_v48 = vrot.slane %v1881_v41, %v3386_v44  ;;  %v1896_v49 = vrot.slane %v1882_v42, %v3386_v44 }
 0x55d   : > { %v1901_v51 = vcombine.low %v1873_v46, %v1880_v47  ;;  %v2356_v52 = vcombine.high %v1873_v46, %v1880_v47  ;;  %v1917_v53 = vcombine.low %v1889_v48, %v1896_v49  ;;  %v2357_v54 = vcombine.high %v1889_v48, %v1896_v49 }
 0x55f   : > { %v1908_v55 = vrot.slane %v1901_v51, %v3384_v37  ;;  %v1916_v56 = vrot.slane %v2356_v52, %v3384_v37  ;;  %v1924_v57 = vrot.slane %v1917_v53, %v3384_v37  ;;  %v1932_v58 = vrot.slane %v2357_v54, %v3384_v37 }
 0x561   : > { %v1934_v59 = vcombine.high %v1908_v55, %v1916_v56  ;;  %v1950_v60 = vcombine.high %v1924_v57, %v1932_v58  ;;  %v1933_v61 = vcombine.low %v1908_v55, %v1916_v56  ;;  %v1949_v62 = vcombine.low %v1924_v57, %v1932_v58 }
 0x563   : > { %v1948_v63 = vrot.slane %v1934_v59, %v3386_v44  ;;  %v1964_v2 = vrot.slane %v1950_v60, %v3386_v44  ;;  %v1941_v3 = vrot.slane %v1933_v61, %v3386_v44  ;;  %v1957_v4 = vrot.slane %v1949_v62, %v3386_v44 }
 0x565   : > { %v1967_v5 = vcombine.low %v1948_v63, %v1964_v2  ;;  %v1966_v6 = vcombine.high %v1941_v3, %v1957_v4  ;;  %v1968_v7 = vcombine.high %v1948_v63, %v1964_v2  ;;  %v1965_v8 = vcombine.low %v1941_v3, %v1957_v4 }
 0x567   : > { %1974 = vrot.lane.b32.xlu0 %v1967_v5, %s2978_s3  ;;  %1970 = vrot.lane.b32.xlu1 %v1966_v6, %s2979_s5 }
 0x56b   : > { %1978 = vrot.lane.b32.xlu1 %v1968_v7, %s2980_s22 }
 0x5d9   : > { %v1971_v37 = vpop.permute.xlu1 %1970  ;;  %v1975_v9 = vpop.permute.xlu0 %1974 }
 0x5da   : > { %v1981_v10 = vsel %vm1188_vm2, %v1965_v8, %v1971_v37 }
 0x5db   : > { %v1983_v44 = vsel %vm1982_vm3, %v1981_v10, %v1975_v9 }
 0x5dd   : > { %v1979_v11 = vpop.permute.xlu1 %1978 }
 0x5de   : > { %v1985_v12 = vsel %vm1984_vm4, %v1983_v44, %v1979_v11 }
 0x5df   : > { %2487 = vmatmul.mubr.msk.f32.vlgmr.msra.gmra.mrb[8].mxu0 %vm522_vm1, %v1985_v12 }
 0x6b2   : > { %v2059_v13 = vpop.f32.mrb[8].mxu0 }
 0x6b3   : > { %v2060_v14 = vadd.f32 %v2059_v13, %v3360_v15  ;;  %v2488_v16 = vpop.f32.mrb[9].mxu0 }
 0x6b5   : > { %v2063_v17 = vsel %vm522_vm1, %v2060_v14, 0.0 }
 0x6b6   : > { %2064 = vadd.xlane.f32.xlu0 %v2063_v17 }
 0x743   : > { %v2065_v18 = vpop.xlane.xlu0 %2064 }
 0x744   : > { %v2067_v19 = vmul.f32 0.03125, %v2065_v18 }
 0x746   : > { %v2068_v20 = vsub.f32 %v2060_v14, %v2067_v19 }
 0x748   : > { %v2069_v21 = vmul.f32 %v2068_v20, %v2068_v20 }
 0x74a   : > { %v2070_v22 = vsel %vm522_vm1, %v2069_v21, 0.0 }
 0x74b   : > { %2071 = vadd.xlane.f32.xlu1 %v2070_v22 }
 0x74c   : > { %2862 = shalt.err (!%p2859_p4)
}
 0x74d   : > { %s2863_s27 = scalar_lea.hbm %s3526_s13, 512  ;;  %s2867_s23 = scalar_lea.hbm %s3683_s24, 1024 }
 0x74e   : > { %p2864_p10 = scmp.ne.s32.totalorder %s3526_s13, %s2863_s27  ;;  %p2868_p12 = scmp.lt.u32.totalorder %s3526_s13, %s3683_s24 }
 0x74f   : > { %p2869_p0 = scmp.lt.u32.totalorder %s2867_s23, %s2863_s27  ;;  %p2871_p9 = scmp.lt.u32.totalorder %s2863_s27, %s3526_s13 }
 0x750   : > { %p2865_p3 = pnand %p2864_p10, %p3684_p13 }
 0x751   : > { %p2870_p7 = por %p2869_p0, %p2868_p12 }
 0x752   : > { %p2866_p8 = pneg %p2865_p3 }
 0x753   : > { %p2872_p11 = por %p2871_p9, %p2870_p7 }
 0x755   : > { %p2873_p1 = pnand %p2872_p11, %p2866_p8 }
 0x757   : > { %2876 = shalt.err (!%p2873_p1)
}
 0x758   : > { %s2982_s1 = smov 128   ;;  %s3685_s21 = sld [smem:[#allocation31_spill]] }
 0x759   : > { %2536 = dma.vmem_to_hbm [thread:$0]  (%p3684_p13), %s3528_s16, 512, %s3526_s13, %s2100_s30, %s2982_s1, %s2982_s1, %s2979_s5  }
 0x75a   : > { %s3686_s8 = sld [smem:[#allocation32_spill]]  ;;  %s2363_s10 = sshll.u32 %s3060_s19, 7 }
 0x75b   : > { %s507_s20 = scalar_lea.vmem [#allocation14], %s3325_s7  ;;  %s3687_s13 = sld [smem:[#allocation33_spill]] }
 0x75c   : > { %s2113_s26 = sshll.u32 %s507_s20, 4  ;;  %s2095_s29 = scalar_lea.sflag [#allocation4], %s3322_s17  ;;  %s3568_s26 = int_to_ptr.vmem [resolvable:$true] %s2113_s26 }
 0x75d   : > { %s2877_s11 = scalar_lea.vmem %s3568_s26, 128  ;;  %s2983_s19 = smov [#allocation14]  }
 0x75e   : > { %v2359_v26 = vld [vmem:[%s3685_s21] ss:$0 sm:$0xff]  ;;  %p2878_p6 = scmp.ne.s32.totalorder %s3568_s26, %s2877_s11  ;;  %s2881_s7 = sshll.u32 %s2983_s19, 4  ;;  %s2882_s7 = int_to_ptr.vmem [resolvable:$false] %s2881_s7 }
 0x75f   : > { %s2883_s23 = scalar_lea.vmem %s2882_s7, 256  ;;  %p2884_p4 = scmp.lt.s32.totalorder %s3568_s26, %s2882_s7 }
 0x760   : > { %v2360_v28 = vld [vmem:[%s3686_s8] ss:$0 sm:$0xff]  ;;  %p2879_p5 = pnand %p2878_p6, %p3684_p13  ;;  %p2885_p10 = scmp.lt.s32.totalorder %s2883_s23, %s2877_s11 }
 0x761   : > { %s3688_s30 = smov %s3687_s13  ;;  %s3566_s27 = scalar_lea.hbm %s3687_s13, %s2363_s10 }
 0x762   : > { %p2880_p2 = pneg %p2879_p5  ;;  %p2886_p3 = por %p2885_p10, %p2884_p4 }
 0x764   : > { %p2887_p8 = pnand %p2886_p3, %p2880_p2 }
 0x7d8   : > { %v2072_v15 = vpop.xlane.xlu1 %2071 }
 0x7d9   : > { %v2073_v23 = vmul.f32 0.03125, %v2072_v15 }
 0x7db   : > { %v2074_v24 = vadd.f32 1e-06, %v2073_v23 }
 0x7dd   : > { %2645 = vrsqrt.f32 %v2074_v24 }
 0x7e7   : > { %v2646_v25 = vpop.eup %2645 }
 0x7e8   : > { %v2076_v27 = vmul.f32 %v2646_v25, %v2068_v20 }
 0x7ea   : > { %v2084_v29 = vmul.f32 %v2359_v26, %v2076_v27 }
 0x7ec   : > { %v2092_v30 = vadd.f32 %v2360_v28, %v2084_v29 }
 0x7ee   : > { %2093 = vst.msk [vmem:[%s507_s20] sm:$0xff] %vm522_vm1, %v2092_v30 }
 0x7ef   : > { %2890 = shalt.err (!%p2887_p8)
}
 0x7f0   : > { %s2891_s17 = scalar_lea.hbm %s3566_s27, 128  ;;  %s2895_s1 = scalar_lea.hbm %s3688_s30, 256 }
 0x7f1   : > { %p2892_p12 = scmp.ne.s32.totalorder %s3566_s27, %s2891_s17  ;;  %p2896_p9 = scmp.lt.u32.totalorder %s3566_s27, %s3688_s30 }
 0x7f2   : > { %p2897_p11 = scmp.lt.u32.totalorder %s2895_s1, %s2891_s17  ;;  %p2899_p6 = scmp.lt.u32.totalorder %s2891_s17, %s3566_s27 }
 0x7f3   : > { %p2893_p0 = pnand %p2892_p12, %p3684_p13 }
 0x7f4   : > { %p2898_p1 = por %p2897_p11, %p2896_p9 }
 0x7f5   : > { %p2894_p7 = pneg %p2893_p0 }
 0x7f6   : > { %p2900_p5 = por %p2899_p6, %p2898_p1 }
 0x7f8   : > { %p2901_p2 = pnand %p2900_p5, %p2894_p7 }
 0x7fa   : > { %2904 = shalt.err (!%p2901_p2)
}
 0x7fb   : > { %2535 = dma.vmem_to_hbm [thread:$0]  (%p3684_p13), %s3568_s26, 128, %s3566_s27, %s2095_s29  }
 0x7fc PF: > { %s3689_s21 = sld [smem:[#allocation23_spill]]  ;;  %s3690_s28 = sld [smem:[#allocation27_spill]] }
 0x7fd   : > { %s3691_s9 = sld [smem:[#allocation24_spill]] }
 0x802   : > { %s2141_s8 = sand.u32 1, %s3689_s21   ;;  %p3692_p4 = scmp.ne.s32.totalorder %s3690_s28, 0 }
 0x803   : > { %p3693_p10 = scmp.ge.s32.totalorder %s3691_s9, 2  ;;  %s2142_s10 = scalar_lea.sflag [#allocation4], %s2141_s8 }
 0x805   : > { %p2563_p3 = pnand %p3693_p10, %p3692_p4 }
 0x807   : > { %2938 = dma.done.wait (!%p2563_p3), %s2142_s10, 128  }
 0x808   : > { %2940 = vsyncadd (!%p2563_p3), %s2142_s10, 4294967168  ;;  %s2151_s20 = scalar_lea.sflag [#allocation16], %s2141_s8 }
 0x809   : > { %2942 = dma.done.wait (!%p2563_p3), %s2151_s20, 512  }
 0x80a   : > { %2944 = vsyncadd (!%p2563_p3), %s2151_s20, 4294966784  ;;  %s3694_s16 = sld [smem:[#allocation25_spill]]  ;;  %s3695_s12 = sld [smem:[#allocation26_spill]] }
 0x80b   : > { %s3696_s13 = smov %s2951_s14  ;;  %s3697_s14 = smov %s2955_s15 }
 0x810   : > { %p32_p13 = scmp.ge.s32.totalorder %s3694_s16, 4   ;;  %s3698_s15 = smov %s3695_s12 }
 0x812   :  { %34 = sbr.rel (!%p32_p13) target bundleno = 19 (0x13), region = 158 }
 0x819   :  { %2156 = vsyncpa [#allocation3], 1 }
 0x81a   :  { %2158 = vsyncpa [#allocation3 + $0x1], 1 }
 0x81b   :  { %2159 = vsyncpa [#allocation6], 1 }
 0x81c   :  { %2161 = vsyncpa [#allocation6 + $0x1], 1 }
 0x81d   :  { %2162 = vsyncpa [#allocation9], 1 }
 0x81e   :  { %2163 = vsyncpa [#allocation12], 1 }
 0x81f   :  { %2164 = vsyncpa [#allocation4], 1 }
 0x820   :  { %2166 = vsyncpa [#allocation4 + $0x1], 1 }
 0x821   :  { %2167 = vsyncpa [#allocation16], 1 }
 0x822   :  { %2169 = vsyncpa [#allocation16 + $0x1], 1 }

</bundles_post_ra>
